<compile_context>
chip_gen: v5e
topology: v5e:2x2
jax: 0.10.0
libtpu: 0.0.40
codegen_flags: <defaults>
</compile_context>

<pallas_src>
import functools

import jax
import jax.numpy as jnp
from jax.experimental import pallas as pl
from jax.experimental.pallas import tpu as pltpu


LEAKY_SLOPE = 0.2          # PyG GATConv default negative_slope
LANE = 128
SUBLANE = 8
ROW_TILE = 256             # destination-row tile of the streamed adjacency

# architecture constants of the PyTorch module
HEADS = (4, 4, 6)
HID_CH = 16                # per-head out_channels of conv1 / conv2


def _round_up(v, m):
    return (v + m - 1) // m * m


def _elu(x):
    # exp only evaluated on the non-positive branch (avoids overflow lanes).
    return jnp.where(x > 0.0, x, jnp.exp(jnp.minimum(x, 0.0)) - 1.0)


# --------------------------------- kernel ------------------------------------

def _gat_layer_kernel(x_ref, xd_ref, adj_ref, w_ref, a_ref, b_ref, out_ref,
                      *, n_heads, f, mode, num_classes, c_pad):
    """One GATConv layer for one destination-row tile.

    x_ref   : (N, C)       bf16  all source-node features (resident)
    xd_ref  : (TILE_R, C)  bf16  this tile's destination-node features
    adj_ref : (TILE_R, N)  bf16  0/1 mask, adj[i, j] = 1 iff edge j -> i
    out_ref : (TILE_R, H*F) bf16 (concat)  or (TILE_R, c_pad) f32 (mean+logsm)
    """
    tile_r = adj_ref.shape[0]
    x_bf = x_ref[...]
    adj_t = adj_ref[...]

    # Dense feature transform for ALL source nodes + all 2*heads attention
    # scores in a single MXU call (block-diagonal attention matrix).
    h = jnp.dot(x_bf, w_ref[...], preferred_element_type=jnp.float32)
    h_bf = h.astype(jnp.bfloat16)                                  # (N, H*F)
    alpha_src = jnp.dot(h_bf, a_ref[...],
                        preferred_element_type=jnp.float32)        # (N, 2H)

    # Destination scores for this tile's rows (recomputed from the row-tiled
    # copy of x — avoids any dynamic value slicing; cost is tiny).
    h_dst = jnp.dot(xd_ref[...], w_ref[...],
                    preferred_element_type=jnp.float32).astype(jnp.bfloat16)
    alpha_dst = jnp.dot(h_dst, a_ref[...],
                        preferred_element_type=jnp.float32)        # (TILE_R, 2H)

    # Per-head max of the source scores (analytic softmax stabilizer input):
    # one (N, H) reduce instead of H per-row (TILE_R, N) reductions.
    src_max = jnp.max(alpha_src[:, :n_heads], axis=0, keepdims=True)  # (1, H)

    def head_out(hd):
        s_src = alpha_src[:, hd:hd + 1]                            # (N, 1)
        s_dst = alpha_dst[:, n_heads + hd:n_heads + hd + 1]        # (TILE_R, 1)
        # LeakyReLU is monotone, so leaky(s_dst + max_j s_src) >= every row
        # max -> valid stabilizer with no (TILE_R, N) row-max reduction.
        z = s_dst + src_max[:, hd:hd + 1]
        m = jnp.maximum(z, LEAKY_SLOPE * z)
        e = s_dst + s_src.T                                        # (TILE_R, N)
        e = jnp.maximum(e, LEAKY_SLOPE * e) - m                    # LeakyReLU + shift
        p = jnp.where(adj_t > 0, jnp.exp(e), 0.0)                  # masked, UNnormalized
        denom = jnp.sum(p, axis=1, keepdims=True)                  # (TILE_R, 1)
        o = jnp.dot(p.astype(jnp.bfloat16), h_bf[:, hd * f:(hd + 1) * f],
                    preferred_element_type=jnp.float32)            # (TILE_R, F)
        # Deferred softmax normalization: scale the narrow result, not the
        # (TILE_R, N) probabilities; reciprocal runs on the otherwise-idle EUP.
        return o * pl.reciprocal(denom, approx=True)

    outs = [head_out(hd) for hd in range(n_heads)]

    if mode == "concat":
        # conv1 / conv2: concat heads, + bias, ELU (dropout = id in eval).
        y = jnp.concatenate(outs, axis=1) + b_ref[...]
        out_ref[...] = _elu(y).astype(out_ref.dtype)
    else:
        # conv3: mean over heads, + bias, ELU (per the module), log_softmax.
        acc = outs[0]
        for o in outs[1:]:
            acc = acc + o
        y = _elu(acc * (1.0 / n_heads) + b_ref[...])               # (TILE_R, classes)
        m_row = jnp.max(y, axis=1, keepdims=True)
        lse = m_row + jnp.log(jnp.sum(jnp.exp(y - m_row), axis=1, keepdims=True))
        logp = (y - lse).astype(jnp.float32)
        if c_pad > num_classes:
            # Lane-dense 128-wide store; padding lanes sliced off in wrapper.
            pad = jnp.zeros((tile_r, c_pad - num_classes), jnp.float32)
            logp = jnp.concatenate([logp, pad], axis=1)
        out_ref[...] = logp


# ------------------------------ per-layer call --------------------------------

def _layer_vmem_limit(n, tile_r, c_in, hf, out_w):
    """Rough per-call VMEM footprint with 2x headroom, clamped under v7x 64MiB."""
    adj_tiles = 2 * tile_r * n * 2            # double-buffered bf16 adj row tile
    x_full = 2 * n * c_in * 2                 # resident source features (bf16)
    x_tile = 2 * tile_r * c_in * 2
    h_alpha = n * hf * (4 + 2) + n * 64       # h f32 + h bf16 + alpha
    score_tmp = 3 * tile_r * n * 4            # e / p transients
    out_tiles = 2 * tile_r * out_w * 4
    need = adj_tiles + x_full + x_tile + h_alpha + score_tmp + out_tiles + (1 << 20)
    return int(min(max(2 * need, 16 << 20), 56 << 20))


def _layer_cost(n, tile_r, c_in, n_heads, f):
    t = n // tile_r
    hf = n_heads * f
    transform = t * (2 * n * c_in * hf + 2 * n * hf * 2 * n_heads)
    attn_mm = 2 * n_heads * n * n * f
    elementwise = 6 * n_heads * n * n
    return pl.CostEstimate(
        flops=int(transform + attn_mm + elementwise),
        transcendentals=int(n_heads * n * n),
        bytes_accessed=int(2 * n * n + 2 * n * c_in + 4 * n * hf))


def _run_layer(x_bf, adj_bf, lp, *, n_heads, f, mode, num_classes=0,
               c_pad=LANE):
    n, c_in = x_bf.shape
    tile_r = min(ROW_TILE, n)
    assert n % tile_r == 0
    hf = n_heads * f
    out_w = hf if mode == "concat" else c_pad
    out_dtype = jnp.bfloat16 if mode == "concat" else jnp.float32

    kernel = functools.partial(_gat_layer_kernel, n_heads=n_heads, f=f,
                               mode=mode, num_classes=num_classes, c_pad=c_pad)
    return pl.pallas_call(
        kernel,
        out_shape=jax.ShapeDtypeStruct((n, out_w), out_dtype),
        grid_spec=pltpu.PrefetchScalarGridSpec(
            num_scalar_prefetch=0,
            grid=(n // tile_r,),
            in_specs=[
                pl.BlockSpec((n, c_in), lambda r: (0, 0)),       # x: all sources, resident
                pl.BlockSpec((tile_r, c_in), lambda r: (r, 0)),  # x: this tile's dst rows
                pl.BlockSpec((tile_r, n), lambda r: (r, 0)),     # adj destination-row tile
                pl.BlockSpec(lp["w"].shape, lambda r: (0, 0)),
                pl.BlockSpec(lp["A"].shape, lambda r: (0, 0)),
                pl.BlockSpec(lp["b"].shape, lambda r: (0, 0)),
            ],
            out_specs=pl.BlockSpec((tile_r, out_w), lambda r: (r, 0)),
        ),
        compiler_params=pltpu.CompilerParams(
            dimension_semantics=("parallel",),
            vmem_limit_bytes=_layer_vmem_limit(n, tile_r, c_in, hf, out_w)),
        cost_estimate=_layer_cost(n, tile_r, c_in, n_heads, f),
    )(x_bf, x_bf, adj_bf, lp["w"], lp["A"], lp["b"])


# ----------------------------- parameter packing -----------------------------

def init_gatconv_params(key, in_ch, out_ch, heads, concat):
    k_w, k_s, k_d, k_b = jax.random.split(key, 4)
    out_dim = heads * out_ch if concat else out_ch
    w = jax.random.normal(k_w, (in_ch, heads * out_ch), jnp.float32) * 0.1
    a_src = jax.random.normal(k_s, (heads, out_ch), jnp.float32) * 0.1
    a_dst = jax.random.normal(k_d, (heads, out_ch), jnp.float32) * 0.1
    bias = jax.random.normal(k_b, (1, out_dim), jnp.float32) * 0.01
    return dict(w=w, a_src=a_src, a_dst=a_dst, bias=bias)


def _block_att_matrix(a_src, a_dst):
    """(heads, F) att vectors -> (heads*F, 2*heads) block matrix so that
    h @ A == [alpha_src_0..H-1 | alpha_dst_0..H-1] in a single MXU call."""
    heads, f = a_src.shape
    A = jnp.zeros((heads * f, 2 * heads), jnp.float32)
    for hd in range(heads):
        A = A.at[hd * f:(hd + 1) * f, hd].set(a_src[hd])
        A = A.at[hd * f:(hd + 1) * f, heads + hd].set(a_dst[hd])
    return A


def pack_params(raw, num_classes, c_pad=LANE):
    """bf16 MXU weights, per-head att vectors folded into one block matrix.
    conv3 is kept at its TRUE class width (no padded weights/features); only
    the final output slab is widened to c_pad lanes inside the kernel."""
    assert num_classes <= c_pad
    packed = {"num_classes": num_classes, "c_pad": c_pad}
    for name, p in raw.items():
        packed[name] = dict(
            w=p["w"].astype(jnp.bfloat16),
            A=_block_att_matrix(p["a_src"], p["a_dst"]).astype(jnp.bfloat16),
            b=p["bias"].astype(jnp.float32))
    return packed


# --------------------------------- wrapper -----------------------------------

def build_dense_adj(edge_index, n_pad):
    """adj[i, j] = 1 iff edge j -> i (edge_index = [src; dst]) or i == j
    (PyG add_self_loops=True).  Padded nodes get only a self-loop, keeping
    their softmax denominator finite; they are sliced away afterwards."""
    src, dst = edge_index[0], edge_index[1]
    adj = jnp.zeros((n_pad, n_pad), jnp.float32)
    adj = adj.at[dst, src].set(1.0)
    adj = jnp.maximum(adj, jnp.eye(n_pad, dtype=jnp.float32))
    return adj.astype(jnp.bfloat16)


def gat_eval(x, edge_index, params):
    """Pad nodes, run the three row-tiled GATConv kernels, un-pad."""
    num_nodes, c_in = x.shape
    n_pad = _round_up(max(num_nodes, SUBLANE), SUBLANE)
    if n_pad > ROW_TILE:
        n_pad = _round_up(n_pad, ROW_TILE)
    x_pad = jnp.zeros((n_pad, c_in), jnp.float32).at[:num_nodes].set(x)
    adj = build_dense_adj(edge_index, n_pad)

    h1 = _run_layer(x_pad.astype(jnp.bfloat16), adj, params["conv1"],
                    n_heads=HEADS[0], f=HID_CH, mode="concat")
    h2 = _run_layer(h1, adj, params["conv2"],
                    n_heads=HEADS[1], f=HID_CH, mode="concat")
    out = _run_layer(h2, adj, params["conv3"],
                     n_heads=HEADS[2], f=params["num_classes"], mode="mean",
                     num_classes=params["num_classes"], c_pad=params["c_pad"])
    return out[:num_nodes, :params["num_classes"]]


if __name__ == "__main__":
    key = jax.random.PRNGKey(0)
    k_x, k_e, k_p1, k_p2, k_p3 = jax.random.split(key, 5)

    num_nodes = 16
    num_node_features = 16
    num_classes = 8
    num_edges = 40

    # Node features and a random directed edge list (deterministic).
    x = jax.random.normal(k_x, (num_nodes, num_node_features), jnp.float32)
    edge_index = jax.random.randint(k_e, (2, num_edges), 0, num_nodes,
                                    dtype=jnp.int32)

    raw = {
        "conv1": init_gatconv_params(k_p1, num_node_features, HID_CH, HEADS[0], True),
        "conv2": init_gatconv_params(k_p2, HEADS[0] * HID_CH, HID_CH, HEADS[1], True),
        "conv3": init_gatconv_params(k_p3, HEADS[1] * HID_CH, num_classes, HEADS[2], False),
    }
    params = pack_params(raw, num_classes)

    out = gat_eval(x, edge_index, params)
    out = jax.block_until_ready(out)

    assert out.shape == (num_nodes, num_classes)
    assert bool(jnp.all(jnp.isfinite(out)))
    # rows of log_softmax should exponentiate-sum to ~1
    assert bool(jnp.allclose(jnp.sum(jnp.exp(out), axis=1), 1.0, atol=1e-4))
    print("KERNEL_OK")
</pallas_src>

<mosaic_0001>
module attributes {stable_mosaic.version = 11 : i64} {
  func.func @_gat_layer_kernel(%arg0: i32, %arg1: memref<16x16xbf16, #tpu.memory_space<vmem>>, %arg2: memref<16x16xbf16, #tpu.memory_space<vmem>>, %arg3: memref<16x16xbf16, #tpu.memory_space<vmem>>, %arg4: memref<16x64xbf16, #tpu.memory_space<vmem>>, %arg5: memref<64x8xbf16, #tpu.memory_space<vmem>>, %arg6: memref<1x64xf32, #tpu.memory_space<vmem>>, %arg7: memref<16x64xbf16, #tpu.memory_space<vmem>>) attributes {dimension_semantics = [#tpu.dimension_semantics<parallel>], iteration_bounds = array<i64: 1>, scalar_prefetch = 0 : i64, scratch_operands = 0 : i64, tpu.core_type = #tpu.core_type<tc>, window_params = [{pipeline_mode = #tpu.pipeline_mode<synchronous>, transform_indices = @transform_0, window_bounds = array<i64: 16, 16>}, {transform_indices = @transform_1, window_bounds = array<i64: 16, 16>}, {transform_indices = @transform_2, window_bounds = array<i64: 16, 16>}, {pipeline_mode = #tpu.pipeline_mode<synchronous>, transform_indices = @transform_3, window_bounds = array<i64: 16, 64>}, {pipeline_mode = #tpu.pipeline_mode<synchronous>, transform_indices = @transform_4, window_bounds = array<i64: 64, 8>}, {pipeline_mode = #tpu.pipeline_mode<synchronous>, transform_indices = @transform_5, window_bounds = array<i64: 1, 64>}, {transform_indices = @transform_6, window_bounds = array<i64: 16, 64>}]} {
    %c0 = arith.constant 0 : index
    %c0_0 = arith.constant 0 : index
    %0 = vector.load %arg1[%c0, %c0_0] : memref<16x16xbf16, #tpu.memory_space<vmem>>, vector<16x16xbf16>
    %c0_1 = arith.constant 0 : index
    %c0_2 = arith.constant 0 : index
    %1 = vector.load %arg3[%c0_1, %c0_2] : memref<16x16xbf16, #tpu.memory_space<vmem>>, vector<16x16xbf16>
    %c0_3 = arith.constant 0 : index
    %c0_4 = arith.constant 0 : index
    %2 = vector.load %arg4[%c0_3, %c0_4] : memref<16x64xbf16, #tpu.memory_space<vmem>>, vector<16x64xbf16>
    %cst = arith.constant dense<0.000000e+00> : vector<16x64xf32>
    %3 = tpu.matmul %0, %2, %cst {dimension_numbers = #tpu.dot_dimension_numbers<[1], [0], [0], [1], [0, 0, 1, 1], [], []>} : vector<16x16xbf16>, vector<16x64xbf16>, vector<16x64xf32> -> vector<16x64xf32>
    %4 = arith.truncf %3 : vector<16x64xf32> to vector<16x64xbf16>
    %c0_5 = arith.constant 0 : index
    %c0_6 = arith.constant 0 : index
    %5 = vector.load %arg5[%c0_5, %c0_6] : memref<64x8xbf16, #tpu.memory_space<vmem>>, vector<64x8xbf16>
    %cst_7 = arith.constant dense<0.000000e+00> : vector<16x8xf32>
    %6 = tpu.matmul %4, %5, %cst_7 {dimension_numbers = #tpu.dot_dimension_numbers<[1], [0], [0], [1], [0, 0, 1, 1], [], []>} : vector<16x64xbf16>, vector<64x8xbf16>, vector<16x8xf32> -> vector<16x8xf32>
    %c0_8 = arith.constant 0 : index
    %c0_9 = arith.constant 0 : index
    %7 = vector.load %arg2[%c0_8, %c0_9] : memref<16x16xbf16, #tpu.memory_space<vmem>>, vector<16x16xbf16>
    %c0_10 = arith.constant 0 : index
    %c0_11 = arith.constant 0 : index
    %8 = vector.load %arg4[%c0_10, %c0_11] : memref<16x64xbf16, #tpu.memory_space<vmem>>, vector<16x64xbf16>
    %cst_12 = arith.constant dense<0.000000e+00> : vector<16x64xf32>
    %9 = tpu.matmul %7, %8, %cst_12 {dimension_numbers = #tpu.dot_dimension_numbers<[1], [0], [0], [1], [0, 0, 1, 1], [], []>} : vector<16x16xbf16>, vector<16x64xbf16>, vector<16x64xf32> -> vector<16x64xf32>
    %10 = arith.truncf %9 : vector<16x64xf32> to vector<16x64xbf16>
    %c0_13 = arith.constant 0 : index
    %c0_14 = arith.constant 0 : index
    %11 = vector.load %arg5[%c0_13, %c0_14] : memref<64x8xbf16, #tpu.memory_space<vmem>>, vector<64x8xbf16>
    %cst_15 = arith.constant dense<0.000000e+00> : vector<16x8xf32>
    %12 = tpu.matmul %10, %11, %cst_15 {dimension_numbers = #tpu.dot_dimension_numbers<[1], [0], [0], [1], [0, 0, 1, 1], [], []>} : vector<16x64xbf16>, vector<64x8xbf16>, vector<16x8xf32> -> vector<16x8xf32>
    %13 = vector.extract_strided_slice %6 {offsets = [0, 0], sizes = [16, 4], strides = [1, 1]} : vector<16x8xf32> to vector<16x4xf32>
    %cst_16 = arith.constant dense<0xFF800000> : vector<4xf32>
    %14 = vector.multi_reduction <maximumf>, %13, %cst_16 [0] : vector<16x4xf32> to vector<4xf32>
    %15 = vector.shape_cast %14 : vector<4xf32> to vector<1x4xf32>
    %16 = vector.extract_strided_slice %6 {offsets = [0, 0], sizes = [16, 1], strides = [1, 1]} : vector<16x8xf32> to vector<16x1xf32>
    %17 = vector.extract_strided_slice %12 {offsets = [0, 4], sizes = [16, 1], strides = [1, 1]} : vector<16x8xf32> to vector<16x1xf32>
    %18 = vector.extract_strided_slice %15 {offsets = [0, 0], sizes = [1, 1], strides = [1, 1]} : vector<1x4xf32> to vector<1x1xf32>
    %19 = vector.broadcast %18 : vector<1x1xf32> to vector<16x1xf32>
    %20 = arith.addf %17, %19 : vector<16x1xf32>
    %cst_17 = arith.constant 2.000000e-01 : f32
    %21 = vector.broadcast %cst_17 : f32 to vector<16x1xf32>
    %22 = arith.mulf %21, %20 : vector<16x1xf32>
    %23 = arith.maximumf %20, %22 : vector<16x1xf32>
    %24 = tpu.transpose %16, [1, 0] : vector<16x1xf32> -> vector<1x16xf32>
    %25 = vector.broadcast %17 : vector<16x1xf32> to vector<16x16xf32>
    %26 = vector.broadcast %24 : vector<1x16xf32> to vector<16x16xf32>
    %27 = arith.addf %25, %26 : vector<16x16xf32>
    %cst_18 = arith.constant 2.000000e-01 : f32
    %28 = vector.broadcast %cst_18 : f32 to vector<16x16xf32>
    %29 = arith.mulf %28, %27 : vector<16x16xf32>
    %30 = arith.maximumf %27, %29 : vector<16x16xf32>
    %31 = vector.broadcast %23 : vector<16x1xf32> to vector<16x16xf32>
    %32 = arith.subf %30, %31 : vector<16x16xf32>
    %cst_19 = arith.constant 0.000000e+00 : bf16
    %33 = vector.broadcast %cst_19 : bf16 to vector<16x16xbf16>
    %34 = arith.cmpf ogt, %1, %33 : vector<16x16xbf16>
    %35 = math.exp %32 : vector<16x16xf32>
    %cst_20 = arith.constant 0.000000e+00 : f32
    %36 = vector.broadcast %cst_20 : f32 to vector<16x16xf32>
    %37 = arith.select %34, %35, %36 : vector<16x16xi1>, vector<16x16xf32>
    %cst_21 = arith.constant dense<0.000000e+00> : vector<16xf32>
    %38 = vector.multi_reduction <add>, %37, %cst_21 [1] : vector<16x16xf32> to vector<16xf32>
    %39 = vector.shape_cast %38 : vector<16xf32> to vector<16x1xf32>
    %40 = arith.truncf %37 : vector<16x16xf32> to vector<16x16xbf16>
    %41 = vector.extract_strided_slice %4 {offsets = [0, 0], sizes = [16, 16], strides = [1, 1]} : vector<16x64xbf16> to vector<16x16xbf16>
    %cst_22 = arith.constant dense<0.000000e+00> : vector<16x16xf32>
    %42 = tpu.matmul %40, %41, %cst_22 {dimension_numbers = #tpu.dot_dimension_numbers<[1], [0], [0], [1], [0, 0, 1, 1], [], []>} : vector<16x16xbf16>, vector<16x16xbf16>, vector<16x16xf32> -> vector<16x16xf32>
    %43 = tpu.reciprocal %39 {approx = true} : vector<16x1xf32> -> vector<16x1xf32>
    %44 = vector.broadcast %43 : vector<16x1xf32> to vector<16x16xf32>
    %45 = arith.mulf %42, %44 : vector<16x16xf32>
    %46 = vector.extract_strided_slice %6 {offsets = [0, 1], sizes = [16, 1], strides = [1, 1]} : vector<16x8xf32> to vector<16x1xf32>
    %47 = vector.extract_strided_slice %12 {offsets = [0, 5], sizes = [16, 1], strides = [1, 1]} : vector<16x8xf32> to vector<16x1xf32>
    %48 = vector.extract_strided_slice %15 {offsets = [0, 1], sizes = [1, 1], strides = [1, 1]} : vector<1x4xf32> to vector<1x1xf32>
    %49 = vector.broadcast %48 : vector<1x1xf32> to vector<16x1xf32>
    %50 = arith.addf %47, %49 : vector<16x1xf32>
    %cst_23 = arith.constant 2.000000e-01 : f32
    %51 = vector.broadcast %cst_23 : f32 to vector<16x1xf32>
    %52 = arith.mulf %51, %50 : vector<16x1xf32>
    %53 = arith.maximumf %50, %52 : vector<16x1xf32>
    %54 = tpu.transpose %46, [1, 0] : vector<16x1xf32> -> vector<1x16xf32>
    %55 = vector.broadcast %47 : vector<16x1xf32> to vector<16x16xf32>
    %56 = vector.broadcast %54 : vector<1x16xf32> to vector<16x16xf32>
    %57 = arith.addf %55, %56 : vector<16x16xf32>
    %cst_24 = arith.constant 2.000000e-01 : f32
    %58 = vector.broadcast %cst_24 : f32 to vector<16x16xf32>
    %59 = arith.mulf %58, %57 : vector<16x16xf32>
    %60 = arith.maximumf %57, %59 : vector<16x16xf32>
    %61 = vector.broadcast %53 : vector<16x1xf32> to vector<16x16xf32>
    %62 = arith.subf %60, %61 : vector<16x16xf32>
    %cst_25 = arith.constant 0.000000e+00 : bf16
    %63 = vector.broadcast %cst_25 : bf16 to vector<16x16xbf16>
    %64 = arith.cmpf ogt, %1, %63 : vector<16x16xbf16>
    %65 = math.exp %62 : vector<16x16xf32>
    %cst_26 = arith.constant 0.000000e+00 : f32
    %66 = vector.broadcast %cst_26 : f32 to vector<16x16xf32>
    %67 = arith.select %64, %65, %66 : vector<16x16xi1>, vector<16x16xf32>
    %cst_27 = arith.constant dense<0.000000e+00> : vector<16xf32>
    %68 = vector.multi_reduction <add>, %67, %cst_27 [1] : vector<16x16xf32> to vector<16xf32>
    %69 = vector.shape_cast %68 : vector<16xf32> to vector<16x1xf32>
    %70 = arith.truncf %67 : vector<16x16xf32> to vector<16x16xbf16>
    %71 = vector.extract_strided_slice %4 {offsets = [0, 16], sizes = [16, 16], strides = [1, 1]} : vector<16x64xbf16> to vector<16x16xbf16>
    %cst_28 = arith.constant dense<0.000000e+00> : vector<16x16xf32>
    %72 = tpu.matmul %70, %71, %cst_28 {dimension_numbers = #tpu.dot_dimension_numbers<[1], [0], [0], [1], [0, 0, 1, 1], [], []>} : vector<16x16xbf16>, vector<16x16xbf16>, vector<16x16xf32> -> vector<16x16xf32>
    %73 = tpu.reciprocal %69 {approx = true} : vector<16x1xf32> -> vector<16x1xf32>
    %74 = vector.broadcast %73 : vector<16x1xf32> to vector<16x16xf32>
    %75 = arith.mulf %72, %74 : vector<16x16xf32>
    %76 = vector.extract_strided_slice %6 {offsets = [0, 2], sizes = [16, 1], strides = [1, 1]} : vector<16x8xf32> to vector<16x1xf32>
    %77 = vector.extract_strided_slice %12 {offsets = [0, 6], sizes = [16, 1], strides = [1, 1]} : vector<16x8xf32> to vector<16x1xf32>
    %78 = vector.extract_strided_slice %15 {offsets = [0, 2], sizes = [1, 1], strides = [1, 1]} : vector<1x4xf32> to vector<1x1xf32>
    %79 = vector.broadcast %78 : vector<1x1xf32> to vector<16x1xf32>
    %80 = arith.addf %77, %79 : vector<16x1xf32>
    %cst_29 = arith.constant 2.000000e-01 : f32
    %81 = vector.broadcast %cst_29 : f32 to vector<16x1xf32>
    %82 = arith.mulf %81, %80 : vector<16x1xf32>
    %83 = arith.maximumf %80, %82 : vector<16x1xf32>
    %84 = tpu.transpose %76, [1, 0] : vector<16x1xf32> -> vector<1x16xf32>
    %85 = vector.broadcast %77 : vector<16x1xf32> to vector<16x16xf32>
    %86 = vector.broadcast %84 : vector<1x16xf32> to vector<16x16xf32>
    %87 = arith.addf %85, %86 : vector<16x16xf32>
    %cst_30 = arith.constant 2.000000e-01 : f32
    %88 = vector.broadcast %cst_30 : f32 to vector<16x16xf32>
    %89 = arith.mulf %88, %87 : vector<16x16xf32>
    %90 = arith.maximumf %87, %89 : vector<16x16xf32>
    %91 = vector.broadcast %83 : vector<16x1xf32> to vector<16x16xf32>
    %92 = arith.subf %90, %91 : vector<16x16xf32>
    %cst_31 = arith.constant 0.000000e+00 : bf16
    %93 = vector.broadcast %cst_31 : bf16 to vector<16x16xbf16>
    %94 = arith.cmpf ogt, %1, %93 : vector<16x16xbf16>
    %95 = math.exp %92 : vector<16x16xf32>
    %cst_32 = arith.constant 0.000000e+00 : f32
    %96 = vector.broadcast %cst_32 : f32 to vector<16x16xf32>
    %97 = arith.select %94, %95, %96 : vector<16x16xi1>, vector<16x16xf32>
    %cst_33 = arith.constant dense<0.000000e+00> : vector<16xf32>
    %98 = vector.multi_reduction <add>, %97, %cst_33 [1] : vector<16x16xf32> to vector<16xf32>
    %99 = vector.shape_cast %98 : vector<16xf32> to vector<16x1xf32>
    %100 = arith.truncf %97 : vector<16x16xf32> to vector<16x16xbf16>
    %101 = vector.extract_strided_slice %4 {offsets = [0, 32], sizes = [16, 16], strides = [1, 1]} : vector<16x64xbf16> to vector<16x16xbf16>
    %cst_34 = arith.constant dense<0.000000e+00> : vector<16x16xf32>
    %102 = tpu.matmul %100, %101, %cst_34 {dimension_numbers = #tpu.dot_dimension_numbers<[1], [0], [0], [1], [0, 0, 1, 1], [], []>} : vector<16x16xbf16>, vector<16x16xbf16>, vector<16x16xf32> -> vector<16x16xf32>
    %103 = tpu.reciprocal %99 {approx = true} : vector<16x1xf32> -> vector<16x1xf32>
    %104 = vector.broadcast %103 : vector<16x1xf32> to vector<16x16xf32>
    %105 = arith.mulf %102, %104 : vector<16x16xf32>
    %106 = vector.extract_strided_slice %6 {offsets = [0, 3], sizes = [16, 1], strides = [1, 1]} : vector<16x8xf32> to vector<16x1xf32>
    %107 = vector.extract_strided_slice %12 {offsets = [0, 7], sizes = [16, 1], strides = [1, 1]} : vector<16x8xf32> to vector<16x1xf32>
    %108 = vector.extract_strided_slice %15 {offsets = [0, 3], sizes = [1, 1], strides = [1, 1]} : vector<1x4xf32> to vector<1x1xf32>
    %109 = vector.broadcast %108 : vector<1x1xf32> to vector<16x1xf32>
    %110 = arith.addf %107, %109 : vector<16x1xf32>
    %cst_35 = arith.constant 2.000000e-01 : f32
    %111 = vector.broadcast %cst_35 : f32 to vector<16x1xf32>
    %112 = arith.mulf %111, %110 : vector<16x1xf32>
    %113 = arith.maximumf %110, %112 : vector<16x1xf32>
    %114 = tpu.transpose %106, [1, 0] : vector<16x1xf32> -> vector<1x16xf32>
    %115 = vector.broadcast %107 : vector<16x1xf32> to vector<16x16xf32>
    %116 = vector.broadcast %114 : vector<1x16xf32> to vector<16x16xf32>
    %117 = arith.addf %115, %116 : vector<16x16xf32>
    %cst_36 = arith.constant 2.000000e-01 : f32
    %118 = vector.broadcast %cst_36 : f32 to vector<16x16xf32>
    %119 = arith.mulf %118, %117 : vector<16x16xf32>
    %120 = arith.maximumf %117, %119 : vector<16x16xf32>
    %121 = vector.broadcast %113 : vector<16x1xf32> to vector<16x16xf32>
    %122 = arith.subf %120, %121 : vector<16x16xf32>
    %cst_37 = arith.constant 0.000000e+00 : bf16
    %123 = vector.broadcast %cst_37 : bf16 to vector<16x16xbf16>
    %124 = arith.cmpf ogt, %1, %123 : vector<16x16xbf16>
    %125 = math.exp %122 : vector<16x16xf32>
    %cst_38 = arith.constant 0.000000e+00 : f32
    %126 = vector.broadcast %cst_38 : f32 to vector<16x16xf32>
    %127 = arith.select %124, %125, %126 : vector<16x16xi1>, vector<16x16xf32>
    %cst_39 = arith.constant dense<0.000000e+00> : vector<16xf32>
    %128 = vector.multi_reduction <add>, %127, %cst_39 [1] : vector<16x16xf32> to vector<16xf32>
    %129 = vector.shape_cast %128 : vector<16xf32> to vector<16x1xf32>
    %130 = arith.truncf %127 : vector<16x16xf32> to vector<16x16xbf16>
    %131 = vector.extract_strided_slice %4 {offsets = [0, 48], sizes = [16, 16], strides = [1, 1]} : vector<16x64xbf16> to vector<16x16xbf16>
    %cst_40 = arith.constant dense<0.000000e+00> : vector<16x16xf32>
    %132 = tpu.matmul %130, %131, %cst_40 {dimension_numbers = #tpu.dot_dimension_numbers<[1], [0], [0], [1], [0, 0, 1, 1], [], []>} : vector<16x16xbf16>, vector<16x16xbf16>, vector<16x16xf32> -> vector<16x16xf32>
    %133 = tpu.reciprocal %129 {approx = true} : vector<16x1xf32> -> vector<16x1xf32>
    %134 = vector.broadcast %133 : vector<16x1xf32> to vector<16x16xf32>
    %135 = arith.mulf %132, %134 : vector<16x16xf32>
    %136 = tpu.concatenate %45, %75, %105, %135 in 1 : vector<16x16xf32>, vector<16x16xf32>, vector<16x16xf32>, vector<16x16xf32> -> vector<16x64xf32>
    %c0_41 = arith.constant 0 : index
    %c0_42 = arith.constant 0 : index
    %137 = vector.load %arg6[%c0_41, %c0_42] : memref<1x64xf32, #tpu.memory_space<vmem>>, vector<1x64xf32>
    %138 = vector.broadcast %137 : vector<1x64xf32> to vector<16x64xf32>
    %139 = arith.addf %136, %138 : vector<16x64xf32>
    %cst_43 = arith.constant 0.000000e+00 : f32
    %140 = vector.broadcast %cst_43 : f32 to vector<16x64xf32>
    %141 = arith.cmpf ogt, %139, %140 : vector<16x64xf32>
    %cst_44 = arith.constant 0.000000e+00 : f32
    %142 = vector.broadcast %cst_44 : f32 to vector<16x64xf32>
    %143 = arith.minimumf %139, %142 : vector<16x64xf32>
    %144 = math.exp %143 : vector<16x64xf32>
    %cst_45 = arith.constant 1.000000e+00 : f32
    %145 = vector.broadcast %cst_45 : f32 to vector<16x64xf32>
    %146 = arith.subf %144, %145 : vector<16x64xf32>
    %147 = arith.select %141, %139, %146 : vector<16x64xi1>, vector<16x64xf32>
    %148 = arith.truncf %147 : vector<16x64xf32> to vector<16x64xbf16>
    %c0_46 = arith.constant 0 : index
    %c0_47 = arith.constant 0 : index
    %149 = vector.load %arg7[%c0_46, %c0_47] : memref<16x64xbf16, #tpu.memory_space<vmem>>, vector<16x64xbf16>
    tpu.vector_store %arg7[%c0_46, %c0_47], %148 {strides = array<i32>} : memref<16x64xbf16, #tpu.memory_space<vmem>>, vector<16x64xbf16>,
    return
  }
  func.func @transform_0(%arg0: i32) -> (i32, i32) {
    %c0_i32 = arith.constant 0 : i32
    %c0_i32_0 = arith.constant 0 : i32
    %c0_i32_1 = arith.constant 0 : i32
    return %c0_i32, %c0_i32_0 : i32, i32
  }
  func.func @transform_1(%arg0: i32) -> (i32, i32) {
    %c0_i32 = arith.constant 0 : i32
    %c0_i32_0 = arith.constant 0 : i32
    return %arg0, %c0_i32 : i32, i32
  }
  func.func @transform_2(%arg0: i32) -> (i32, i32) {
    %c0_i32 = arith.constant 0 : i32
    %c0_i32_0 = arith.constant 0 : i32
    return %arg0, %c0_i32 : i32, i32
  }
  func.func @transform_3(%arg0: i32) -> (i32, i32) {
    %c0_i32 = arith.constant 0 : i32
    %c0_i32_0 = arith.constant 0 : i32
    %c0_i32_1 = arith.constant 0 : i32
    return %c0_i32, %c0_i32_0 : i32, i32
  }
  func.func @transform_4(%arg0: i32) -> (i32, i32) {
    %c0_i32 = arith.constant 0 : i32
    %c0_i32_0 = arith.constant 0 : i32
    %c0_i32_1 = arith.constant 0 : i32
    return %c0_i32, %c0_i32_0 : i32, i32
  }
  func.func @transform_5(%arg0: i32) -> (i32, i32) {
    %c0_i32 = arith.constant 0 : i32
    %c0_i32_0 = arith.constant 0 : i32
    %c0_i32_1 = arith.constant 0 : i32
    return %c0_i32, %c0_i32_0 : i32, i32
  }
  func.func @transform_6(%arg0: i32) -> (i32, i32) {
    %c0_i32 = arith.constant 0 : i32
    %c0_i32_0 = arith.constant 0 : i32
    return %arg0, %c0_i32 : i32, i32
  }
}

</mosaic_0001>

<bundles_post_ra>
// kernel: tpu_custom_call.1
= control target key start
LH: loop header
LB: loop body
LE: loop exit
PB: predicated region body
PF: predicated region fallthrough
CT: control target
= control target key end

     0   :  { %s966_s0 = inlined_call_operand.vmem [shape: bf16[16,16], index: 0, kind: input, shape index: {}]   ;;  %s967_s1 = inlined_call_operand.vmem [shape: bf16[16,16], index: 1, kind: input, shape index: {}]   ;;  %s968_s2 = inlined_call_operand.vmem [shape: bf16[16,16], index: 2, kind: input, shape index: {}]   ;;  %s969_s3 = inlined_call_operand.vmem [shape: bf16[16,64], index: 3, kind: input, shape index: {}]   ;;  %s970_s4 = inlined_call_operand.vmem [shape: bf16[64,8], index: 4, kind: input, shape index: {}]   ;;  %s971_s5 = inlined_call_operand.vmem [shape: f32[1,64], index: 5, kind: input, shape index: {}]   ;;  %s972_s6 = inlined_call_operand.hbm [shape: bf16[16,64], index: 6, kind: output, shape index: {}]  }
   0x1   :  { %v693_v0 = vld [vmem:[%s969_s3] sm:$0xff] }
   0x2   :  { %v692_v1 = vld [vmem:[%s966_s0] sm:$0xff] }
   0x3   :  { %v698_v2 = vld [vmem:[%s967_s1] sm:$0xff] }
   0x4   :  { %11 = vsyncpa [#allocation3], 0  ;;  %53 = vmatpush.bf16.msra.mxu0 %v693_v0  ;;  %vm42_vm0 = vcmask 130048   ;;  %134 = vmatpush.bf16.msra.mxu2 %v693_v0  ;;  %v697_v3 = vld [vmem:[%s970_s4 + $0x18] sm:$0xff]  ;;  %v696_v4 = vld [vmem:[%s970_s4 + $0x10] sm:$0xff]  ;;  %vm99_vm1 = vcmask 523264  }
   0x5   :  { %107 = vmatpush.bf16.msra.mxu1 %v697_v3  ;;  %149 = vmatpush.bf16.msra.mxu3 %v697_v3  ;;  %v695_v5 = vld [vmem:[%s970_s4 + $0x8] sm:$0xff]  ;;  %v694_v6 = vld [vmem:[%s970_s4] sm:$0xff]  ;;  %v796_v17 = vmov 5   ;;  %s797_s4 = smov 125   ;;  %s798_s8 = smov 127   ;;  %v800_v20 = vmov 4  }
   0x6   :  { %721 = vset.pattern.permute.xlu2 %v796_v17  ;;  %s799_s9 = smov 126   ;;  %720 = vset.pattern.permute.xlu1 %v800_v20  ;;  %v801_v22 = vmov 7   ;;  %v802_v24 = vmov 6   ;;  %s803_s10 = smov 80   ;;  %vm159_vm2 = vcmask 31744   ;;  %vm607_vm5 = vcmask 261120  }
   0x7   :  { %662 = vmatmul.msk.bf16.vlgmr.msra.gmra.mxu0 %vm42_vm0, %v692_v1  ;;  %684 = vmatmul.msk.bf16.vlgmr.msra.gmra.mxu2 %vm42_vm0, %v698_v2  ;;  %s804_s11 = smov 4   ;;  %s805_s12 = smov 112   ;;  %v700_v2 = vld [vmem:[%s968_s2] sm:$0xff]   ;;  %vm610_vm6 = vcmask 392192   ;;  %vm633_vm8 = vcmask 519168  }
   0x8   :  { %s806_s13 = smov 96   ;;  %s807_s2 = smov 32  }
   0x9   :  { %108 = vmatpush.bf16.msra.mxu1 %v696_v4  ;;  %150 = vmatpush.bf16.msra.mxu3 %v696_v4  ;;  %s808_s16 = smov 16   ;;  %s809_s17 = smov 48  }
   0xa   :  { %s642_s23 = sshll.u32 %s972_s6, 4  ;;  %s811_s24 = smov 64   ;;  %s643_s23 = int_to_ptr.hbm [resolvable:$true] %s642_s23 }
   0xd   :  { %109 = vmatpush.bf16.msra.mxu1 %v695_v5  ;;  %151 = vmatpush.bf16.msra.mxu3 %v695_v5 }
  0x11   :  { %110 = vmatpush.bf16.msra.mxu1 %v694_v6  ;;  %152 = vmatpush.bf16.msra.mxu3 %v694_v6  ;;  %v701_v6 = vunpack.c.l.bf16 %v700_v2 }
  0x13   :  { %vm908_vm3 = vcmp.gt.f32.partialorder %v701_v6, 0.0 }
  0x84   :  { %v55_v7 = vpop.f32.mrf.mxu0 }
  0x85   :  { %v60_v9 = vpack.c.bf16 %v55_v7, %v55_v7 }
  0x87   :  { %v72_v12 = vunpack.c.l.b16 %v60_v9 }
  0x8a   :  { %v136_v8 = vpop.f32.mrf.mxu2 }
  0x8c   :  { %v57_v10 = vpop.f32.mrf.mxu0 }
  0x8d   :  { %v61_v11 = vpack.c.bf16 %v57_v10, %v57_v10 }
  0x8f   :  { %v73_v13 = vunpack.c.l.b16 %v61_v11 }
  0x91   :  { %v870_v14 = vpack.c.b16 %v73_v13, %v72_v12 }
  0x92   :  { %v138_v15 = vpop.f32.mrf.mxu2 }
  0x93   :  { %679 = vmatmul.msk.bf16.vlgmr.msra.gmra.mxu1 %vm99_vm1, %v870_v14  ;;  %268 = vmatpush.bf16.msrb.mxu0 %v870_v14  ;;  %v141_v16 = vpack.c.bf16 %v138_v15, %v136_v8 }
  0x95   :  { %685 = vmatmul.msk.bf16.vlgmr.msra.gmra.mxu3 %vm99_vm1, %v141_v16  ;;  %v702_v16 = vunpack.c.h.bf16 %v700_v2 }
  0x97   :  { %vm917_vm4 = vcmp.gt.f32.partialorder %v702_v16, 0.0 }
 0x110   :  { %v112_v18 = vpop.f32.mrf.mxu1 }
 0x111   :  { %481 = vrot.lane.b32.xlu2 %v112_v18, %s797_s4  ;;  %281 = vrot.lane.b32.xlu0 %v112_v18, %s798_s8  ;;  %v160_v32 = vsel %vm159_vm2, %v112_v18, -inf }
 0x118   :  { %v154_v19 = vpop.f32.mrf.mxu3  ;;  %v114_v21 = vpop.f32.mrf.mxu1 }
 0x119   :  { %381 = vrot.lane.b32.xlu2 %v112_v18, %s799_s9  ;;  %213 = vperm.xlu1 %720, %v154_v19   ;;  %v161_v31 = vsel %vm159_vm2, %v114_v21, -inf }
 0x11a   :  { %v162_v33 = vmax.f32 %v160_v32, %v161_v31 }
 0x11c   :  { %v163_v35 = vrot.slane %v162_v33, 4 }
 0x11e   :  { %v164_v36 = vmax.f32 %v162_v33, %v163_v35 }
 0x120   :  { %v156_v23 = vpop.f32.mrf.mxu3  ;;  %v165_v38 = vrot.slane %v164_v36, 2 }
 0x121   :  { %283 = vrot.lane.b32.xlu2 %v114_v21, %s798_s8  ;;  %722 = vset.pattern.permute.xlu1 %v801_v22 }
 0x122   :  { %520 = vperm.xlu1 %722, %v154_v19   ;;  %v166_v39 = vmax.f32 %v164_v36, %v165_v38 }
 0x124   :  { %v167_v40 = vrot.slane %v166_v39, 1 }
 0x126   :  { %v168_v42 = vmax.f32 %v166_v39, %v167_v40 }
 0x129   :  { %320 = vperm.xlu2 %721, %v154_v19  }
 0x12a   :  { %724 = vset.pattern.permute.xlu1 %v800_v20 }
 0x12b   :  { %218 = vperm.xlu1 %724, %v156_v23  }
 0x131   :  { %483 = vrot.lane.b32.xlu2 %v114_v21, %s797_s4 }
 0x132   :  { %723 = vset.pattern.permute.xlu2 %v802_v24 }
 0x133   :  { %179 = vxpose.xlu0.b32.start [1/2] (short) (narrow) %v112_v18, 8 }
 0x139   :  { %383 = vrot.lane.b32.xlu2 %v114_v21, %s799_s9 }
 0x13b   :  { %180 = vxpose.xlu0.b32.end [2/2] (short) (narrow) %v114_v21, 8 }
 0x141   :  { %420 = vperm.xlu2 %723, %v154_v19  }
 0x149   :  { %725 = vset.pattern.permute.xlu2 %v796_v17 }
 0x14a   :  { %324 = vperm.xlu2 %725, %v156_v23  }
 0x152   :  { %726 = vset.pattern.permute.xlu2 %v801_v22 }
 0x153   :  { %524 = vperm.xlu2 %726, %v156_v23  }
 0x15b   :  { %557 = vrot.lane.b32.xlu2 %v870_v14, %s803_s10 }
 0x15c   :  { %728 = vset.pattern.permute.xlu2 %v800_v20 }
 0x16b   :  { %v482_v25 = vpop.permute.xlu2 %481 }
 0x173   :  { %v880_v26 = vpop.permute.xlu2 %381 }
 0x17b   :  { %v284_v27 = vpop.permute.xlu2 %283 }
 0x183   :  { %v282_v28 = vpop.permute.xlu0 %281  ;;  %v882_v29 = vpop.permute.xlu2 %320 }
 0x184   :  { %287 = vxpose.xlu1.b32.start [1/2] (short) (narrow) %v282_v28, 8 }
 0x18b   :  { %v484_v30 = vpop.permute.xlu2 %483  ;;  %v214_v55 = vpop.permute.xlu1 %213 }
 0x18c   :  { %288 = vxpose.xlu1.b32.end [2/2] (short) (narrow) %v284_v27, 8 }
 0x193   :  { %v884_v34 = vpop.permute.xlu2 %383 }
 0x194   :  { %v901_v56 = vpop.permute.xlu1 %520 }
 0x19b   :  { %v886_v37 = vpop.permute.xlu2 %420 }
 0x19d   :  { %v219_v59 = vpop.permute.xlu1 %218 }
 0x1a2   :  { %727 = vset.pattern.permute.xlu0 %v802_v24 }
 0x1a4   :  { %v889_v41 = vpop.permute.xlu2 %324 }
 0x1a9   :  { %170 = vrot.lane.b32.xlu0 %v168_v42, %s804_s11 }
 0x1ad   :  { %v892_v43 = vpop.permute.xlu2 %524 }
 0x1b1   :  { %424 = vperm.xlu0 %727, %v156_v23  }
 0x1b5   :  { %v558_v44 = vpop.permute.xlu2 %557 }
 0x1b6   :  { %570 = vmatpush.bf16.msrb.mxu3 %v558_v44 }
 0x1b9   :  { %357 = vrot.lane.b32.xlu0 %v870_v14, %s805_s12 }
 0x1d7   :  { %v195_v45 = vpop.trf.xlu0 }
 0x1d8   :  { %v221_v57 = vperm.slane %v195_v45, 0 }
 0x1da   :  { %v222_v58 = vadd.f32 %v221_v57, %v214_v55  ;;  %v223_v61 = vadd.f32 %v221_v57, %v219_v59 }
 0x1dc   :  { %v224_v60 = vmul.f32 0.2, %v222_v58  ;;  %v225_v3 = vmul.f32 0.2, %v223_v61 }
 0x1de   :  { %v226_v62 = vmax.f32 %v222_v58, %v224_v60  ;;  %v227_v7 = vmax.f32 %v223_v61, %v225_v3 }
 0x21b   :  { %v171_v46 = vpop.permute.xlu0 %170 }
 0x21c   :  { %v173_v47 = vadd.f32 %v171_v46, %v154_v19  ;;  %v174_v49 = vadd.f32 %v171_v46, %v156_v23 }
 0x21e   :  { %v175_v48 = vmul.f32 0.2, %v173_v47  ;;  %v176_v52 = vmul.f32 0.2, %v174_v49 }
 0x220   :  { %v177_v50 = vmax.f32 %v173_v47, %v175_v48  ;;  %v178_v53 = vmax.f32 %v174_v49, %v176_v52 }
 0x222   :  { %435 = vperm.xlu0 %727, %v177_v50   ;;  %230 = vperm.xlu2 %728, %v177_v50  }
 0x223   :  { %v895_v51 = vpop.permute.xlu0 %424 }
 0x228   :  { %v303_v0 = vpop.trf.xlu1 }
 0x229   :  { %v327_v5 = vperm.slane %v303_v0, 0 }
 0x22a   :  { %235 = vperm.xlu2 %728, %v178_v53  }
 0x22b   :  { %v358_v54 = vpop.permute.xlu0 %357  ;;  %v328_v8 = vadd.f32 %v327_v5, %v882_v29  ;;  %v329_v18 = vadd.f32 %v327_v5, %v889_v41 }
 0x22c   :  { %370 = vmatpush.bf16.msrb.mxu2 %v358_v54 }
 0x22d   :  { %v330_v15 = vmul.f32 0.2, %v328_v8  ;;  %v331_v27 = vmul.f32 0.2, %v329_v18 }
 0x22f   :  { %v332_v19 = vmax.f32 %v328_v8, %v330_v15  ;;  %v333_v29 = vmax.f32 %v329_v18, %v331_v27 }
 0x232   :  { %729 = vset.pattern.permute.xlu2 %v796_v17 }
 0x233   :  { %335 = vperm.xlu2 %729, %v177_v50  }
 0x23b   :  { %339 = vperm.xlu2 %729, %v178_v53  }
 0x243   :  { %730 = vset.pattern.permute.xlu2 %v801_v22 }
 0x244   :  { %487 = vxpose.xlu0.b32.start [1/2] (short) (narrow) %v482_v25, 8  ;;  %535 = vperm.xlu2 %730, %v177_v50  }
 0x24c   :  { %488 = vxpose.xlu0.b32.end [2/2] (short) (narrow) %v484_v30, 8  ;;  %539 = vperm.xlu2 %730, %v178_v53  }
 0x254   :  { %457 = vrot.lane.b32.xlu2 %v870_v14, %s806_s13 }
 0x255   :  { %731 = vset.pattern.permute.xlu2 %v802_v24 }
 0x25c   :  { %439 = vperm.xlu2 %731, %v178_v53  }
 0x27c   :  { %v231_v63 = vpop.permute.xlu2 %230 }
 0x27d   :  { %v238_v1 = vsub.f32 %v226_v62, %v231_v63 }
 0x27f   :  { %v244_v4 = vmul.f32 1.442695, %v238_v1 }
 0x281   :  { %734 = vpow2.f32 %v244_v4 }
 0x282   :  { %387 = vxpose.xlu2.b32.start [1/2] (short) (narrow) %v880_v26, 8 }
 0x284   :  { %v236_v9 = vpop.permute.xlu2 %235 }
 0x285   :  { %v239_v10 = vsub.f32 %v227_v7, %v236_v9 }
 0x287   :  { %v735_v12 = vpop.eup %734  ;;  %v246_v13 = vmul.f32 1.442695, %v239_v10 }
 0x288   :  { %v248_v14 = vsel %vm908_vm3, %v735_v12, 0.0 }
 0x289   :  { %736 = vpow2.f32 %v246_v13  ;;  %v250_v17 = vsel %vm42_vm0, %v248_v14, 0.0 }
 0x28a   :  { %388 = vxpose.xlu2.b32.end [2/2] (short) (narrow) %v884_v34, 8  ;;  %251 = vadd.xlane.f32.xlu1 %v250_v17 }
 0x28d   :  { %v336_v21 = vpop.permute.xlu2 %335 }
 0x28e   :  { %v342_v23 = vsub.f32 %v332_v19, %v336_v21 }
 0x28f   :  { %v737_v24 = vpop.eup %736 }
 0x290   :  { %v249_v25 = vsel %vm917_vm4, %v737_v24, 0.0  ;;  %v344_v26 = vmul.f32 1.442695, %v342_v23 }
 0x291   :  { %v256_v28 = vpack.c.bf16 %v249_v25, %v248_v14 }
 0x292   :  { %738 = vpow2.f32 %v344_v26 }
 0x293   :  { %686 = vmatmul.msk.bf16.vlgmr.msrb.gmra.mxu0 %vm42_vm0, %v256_v28 }
 0x294   :  { %v436_v45 = vpop.permute.xlu0 %435 }
 0x295   :  { %v340_v30 = vpop.permute.xlu2 %339 }
 0x296   :  { %v343_v31 = vsub.f32 %v333_v29, %v340_v30 }
 0x298   :  { %v739_v32 = vpop.eup %738  ;;  %v346_v33 = vmul.f32 1.442695, %v343_v31 }
 0x299   :  { %v348_v34 = vsel %vm908_vm3, %v739_v32, 0.0 }
 0x29a   :  { %740 = vpow2.f32 %v346_v33  ;;  %v350_v35 = vsel %vm42_vm0, %v348_v34, 0.0 }
 0x29b   :  { %351 = vadd.xlane.f32.xlu1 %v350_v35 }
 0x29e   :  { %v536_v36 = vpop.permute.xlu2 %535 }
 0x2a0   :  { %v741_v38 = vpop.eup %740 }
 0x2a1   :  { %v349_v39 = vsel %vm917_vm4, %v741_v38, 0.0 }
 0x2a2   :  { %v356_v40 = vpack.c.bf16 %v349_v39, %v348_v34  ;;  %v353_v44 = vsel %vm42_vm0, %v349_v39, 0.0 }
 0x2a4   :  { %687 = vmatmul.msk.bf16.vlgmr.msrb.gmra.mxu2 %vm42_vm0, %v356_v40 }
 0x2a6   :  { %v540_v41 = vpop.permute.xlu2 %539 }
 0x2ae   :  { %v458_v42 = vpop.permute.xlu2 %457 }
 0x2af   :  { %470 = vmatpush.bf16.msrb.mxu1 %v458_v42 }
 0x2b3   :  { %732 = vset.pattern.permute.xlu0 %v801_v22  ;;  %v253_v22 = vsel %vm42_vm0, %v249_v25, 0.0 }
 0x2b6   :  { %v440_v63 = vpop.permute.xlu2 %439 }
 0x2bd   :  { %354 = vadd.xlane.f32.xlu0 %v353_v44 }
 0x2e8   :  { %v503_v46 = vpop.trf.xlu0 }
 0x2e9   :  { %v527_v47 = vperm.slane %v503_v46, 0 }
 0x2eb   :  { %v528_v48 = vadd.f32 %v527_v47, %v901_v56  ;;  %v529_v49 = vadd.f32 %v527_v47, %v892_v43 }
 0x2ed   :  { %v530_v50 = vmul.f32 0.2, %v528_v48  ;;  %v531_v52 = vmul.f32 0.2, %v529_v49 }
 0x2ef   :  { %v532_v53 = vmax.f32 %v528_v48, %v530_v50  ;;  %v533_v54 = vmax.f32 %v529_v49, %v531_v52 }
 0x2f1   :  { %v542_v55 = vsub.f32 %v532_v53, %v536_v36  ;;  %v543_v57 = vsub.f32 %v533_v54, %v540_v41 }
 0x2f3   :  { %v544_v58 = vmul.f32 1.442695, %v542_v55  ;;  %v546_v59 = vmul.f32 1.442695, %v543_v57  ;;  %v733_v55 = vld [vmem:[%s971_s5] ss:$0 sm:$0xff] }
 0x2f4   :  { %s810_s5 = smov [#allocation2]  }
 0x2f5   :  { %742 = vpow2.f32 %v544_v58  ;;  %s640_s20 = sshll.u32 %s810_s5, 4  ;;  %s641_s20 = int_to_ptr.vmem [resolvable:$true] %s640_s20 }
 0x2f6   :  { %744 = vpow2.f32 %v546_v59 }
 0x2fb   :  { %v743_v60 = vpop.eup %742  ;;  %254 = vadd.xlane.f32.xlu2 %v253_v22 }
 0x2fc   :  { %v745_v61 = vpop.eup %744  ;;  %v548_v56 = vsel %vm908_vm3, %v743_v60, 0.0 }
 0x2fd   :  { %v549_v43 = vsel %vm917_vm4, %v745_v61, 0.0  ;;  %v550_v18 = vsel %vm42_vm0, %v548_v56, 0.0  ;;  %v252_v11 = vpop.xlane.xlu1 %251 }
 0x2fe   :  { %v556_v62 = vpack.c.bf16 %v549_v43, %v548_v56  ;;  %v553_v19 = vsel %vm42_vm0, %v549_v43, 0.0 }
 0x300   :  { %689 = vmatmul.msk.bf16.vlgmr.msrb.gmra.mxu3 %vm42_vm0, %v556_v62 }
 0x30e   :  { %v352_v23 = vpop.xlane.xlu1 %351 }
 0x310   :  { %v270_v49 = vpop.f32.mrf.mxu0 }
 0x31b   :  { %v403_v0 = vpop.trf.xlu2 }
 0x31c   :  { %v427_v1 = vperm.slane %v403_v0, 0 }
 0x31e   :  { %v428_v2 = vadd.f32 %v427_v1, %v886_v37  ;;  %v429_v3 = vadd.f32 %v427_v1, %v895_v51 }
 0x320   :  { %v430_v4 = vmul.f32 0.2, %v428_v2  ;;  %v431_v5 = vmul.f32 0.2, %v429_v3 }
 0x322   :  { %v432_v6 = vmax.f32 %v428_v2, %v430_v4  ;;  %v433_v7 = vmax.f32 %v429_v3, %v431_v5  ;;  %v272_v2 = vpop.f32.mrf.mxu0 }
 0x324   :  { %v442_v8 = vsub.f32 %v432_v6, %v436_v45  ;;  %v443_v9 = vsub.f32 %v433_v7, %v440_v63 }
 0x326   :  { %v444_v10 = vmul.f32 1.442695, %v442_v8  ;;  %v446_v12 = vmul.f32 1.442695, %v443_v9 }
 0x327   :  { %v372_v29 = vpop.f32.mrf.mxu2 }
 0x328   :  { %746 = vpow2.f32 %v444_v10 }
 0x329   :  { %748 = vpow2.f32 %v446_v12 }
 0x32e   :  { %v747_v13 = vpop.eup %746 }
 0x32f   :  { %v749_v14 = vpop.eup %748  ;;  %v448_v15 = vsel %vm908_vm3, %v747_v13, 0.0  ;;  %v374_v42 = vpop.f32.mrf.mxu2 }
 0x330   :  { %v449_v37 = vsel %vm917_vm4, %v749_v14, 0.0  ;;  %v450_v51 = vsel %vm42_vm0, %v448_v15, 0.0  ;;  %v355_v35 = vpop.xlane.xlu0 %354 }
 0x331   :  { %v453_v16 = vsel %vm42_vm0, %v449_v37, 0.0  ;;  %v456_v17 = vpack.c.bf16 %v449_v37, %v448_v15  ;;  %451 = vadd.xlane.f32.xlu2 %v450_v51 }
 0x332   :  { %454 = vadd.xlane.f32.xlu1 %v453_v16 }
 0x333   :  { %688 = vmatmul.msk.bf16.vlgmr.msrb.gmra.mxu1 %vm42_vm0, %v456_v17 }
 0x33a   :  { %551 = vadd.xlane.f32.xlu1 %v550_v18 }
 0x342   :  { %554 = vadd.xlane.f32.xlu1 %v553_v19 }
 0x36e   :  { %v255_v21 = vpop.xlane.xlu2 %254 }
 0x383   :  { %v572_v33 = vpop.f32.mrf.mxu3 }
 0x38b   :  { %v574_v46 = vpop.f32.mrf.mxu3 }
 0x3a4   :  { %v452_v20 = vpop.xlane.xlu2 %451 }
 0x3a5   :  { %750 = vrcp.f32 %v452_v20  ;;  %v455_v24 = vpop.xlane.xlu1 %454 }
 0x3a6   :  { %752 = vrcp.f32 %v352_v23 }
 0x3ab   :  { %v751_v25 = vpop.eup %750 }
 0x3ac   :  { %v753_v30 = vpop.eup %752 }
 0x3ad   :  { %v552_v28 = vpop.xlane.xlu1 %551  ;;  %v379_v31 = vmul.f32 %v753_v30, %v372_v29 }
 0x3ae   :  { %754 = vrcp.f32 %v552_v28 }
 0x3af   :  { %756 = vrcp.f32 %v455_v24 }
 0x3b0   :  { %v472_v26 = vpop.f32.mrf.mxu1  ;;  %758 = vrcp.f32 %v355_v35 }
 0x3b1   :  { %v479_v27 = vmul.f32 %v751_v25, %v472_v26 }
 0x3b3   :  { %591 = vrot.lane.b32.xlu1 %v479_v27, %s807_s2 }
 0x3b4   :  { %v755_v32 = vpop.eup %754 }
 0x3b5   :  { %v579_v34 = vmul.f32 %v755_v32, %v572_v33  ;;  %v757_v38 = vpop.eup %756  ;;  %v555_v40 = vpop.xlane.xlu1 %554 }
 0x3b6   :  { %v759_v41 = vpop.eup %758  ;;  %760 = vrcp.f32 %v555_v40 }
 0x3b7   :  { %v380_v44 = vmul.f32 %v759_v41, %v374_v42  ;;  %762 = vrcp.f32 %v252_v11 }
 0x3b8   :  { %v474_v36 = vpop.f32.mrf.mxu1 }
 0x3b9   :  { %v480_v39 = vmul.f32 %v757_v38, %v474_v36 }
 0x3bb   :  { %583 = vrot.lane.b32.xlu1 %v379_v31, %s808_s16 }
 0x3bc   :  { %v761_v45 = vpop.eup %760 }
 0x3bd   :  { %v580_v47 = vmul.f32 %v761_v45, %v574_v46  ;;  %v763_v52 = vpop.eup %762 }
 0x3be   :  { %v277_v53 = vmul.f32 %v763_v52, %v270_v49 }
 0x3c3   :  { %599 = vrot.lane.b32.xlu1 %v579_v34, %s809_s17 }
 0x3cb   :  { %593 = vrot.lane.b32.xlu1 %v480_v39, %s807_s2 }
 0x3d3   :  { %585 = vrot.lane.b32.xlu1 %v380_v44, %s808_s16 }
 0x3db   :  { %601 = vrot.lane.b32.xlu1 %v580_v47, %s809_s17 }
 0x425   :  { %v592_v48 = vpop.permute.xlu1 %591 }
 0x42d   :  { %v584_v50 = vpop.permute.xlu1 %583 }
 0x42e   :  { %v605_v54 = vsel %vm42_vm0, %v277_v53, %v584_v50 }
 0x42f   :  { %v608_v57 = vsel %vm607_vm5, %v605_v54, %v592_v48 }
 0x435   :  { %v600_v58 = vpop.permute.xlu1 %599 }
 0x436   :  { %v611_v59 = vsel %vm610_vm6, %v608_v57, %v600_v58 }
 0x437   :  { %v617_v22 = vadd.f32 %v733_v55, %v611_v59 }
 0x439   :  { %v621_v60 = vmin.f32 %v617_v22, 0.0  ;;  %vm619_vm7 = vcmp.gt.f32.partialorder %v617_v22, 0.0 }
 0x43b   :  { %v623_v61 = vmul.f32 1.442695, %v621_v60 }
 0x43d   :  { %764 = vpow2.f32 %v623_v61  ;;  %v594_v56 = vpop.permute.xlu1 %593 }
 0x43e   :  { %766 = vrcp.f32 %v255_v21 }
 0x443   :  { %v765_v43 = vpop.eup %764 }
 0x444   :  { %v690_v62 = vadd.f32 -1.0, %v765_v43  ;;  %v767_v63 = vpop.eup %766 }
 0x445   :  { %v586_v0 = vpop.permute.xlu1 %585  ;;  %v278_v4 = vmul.f32 %v767_v63, %v272_v2 }
 0x446   :  { %v629_v1 = vsel %vm619_vm7, %v617_v22, %v690_v62 }
 0x447   :  { %v631_v3 = vpack.c.bf16 %v629_v1, %v629_v1  ;;  %v606_v5 = vsel %vm42_vm0, %v278_v4, %v586_v0 }
 0x448   :  { %v609_v6 = vsel %vm607_vm5, %v606_v5, %v594_v56 }
 0x449   :  { %634 = vst.msk [vmem:[#allocation2] sm:$0xf] %vm633_vm8, %v631_v3 }
 0x44d   :  { %v602_v7 = vpop.permute.xlu1 %601 }
 0x44e   :  { %v612_v8 = vsel %vm610_vm6, %v609_v6, %v602_v7 }
 0x44f   :  { %v618_v9 = vadd.f32 %v733_v55, %v612_v8 }
 0x451   :  { %v622_v10 = vmin.f32 %v618_v9, 0.0  ;;  %vm620_vm9 = vcmp.gt.f32.partialorder %v618_v9, 0.0 }
 0x453   :  { %v625_v12 = vmul.f32 1.442695, %v622_v10 }
 0x455   :  { %768 = vpow2.f32 %v625_v12 }
 0x45b   :  { %v769_v13 = vpop.eup %768 }
 0x45c   :  { %v691_v14 = vadd.f32 -1.0, %v769_v13 }
 0x45e   :  { %v630_v15 = vsel %vm620_vm9, %v618_v9, %v691_v14 }
 0x45f   :  { %v632_v37 = vpack.c.bf16 %v630_v15, %v630_v15 }
 0x461   :  { %635 = vst.msk [vmem:[#allocation2 + $0x4] sm:$0xf] %vm633_vm8, %v632_v37 }
 0x462   :  { %648 = dma.vmem_to_hbm [thread:$0]  %s641_s20, 128, %s643_s23, [#allocation3], %s811_s24, %s811_s24, %s804_s11  }
 0x463   :  { %794 = dma.done.wait [#allocation3], 128  }
 0x464   :  { %795 = vsyncadd [#allocation3], 4294967168 }
 0x465   :  { %653 = vsyncpa [#allocation3], 1 }

</bundles_post_ra>
